<compile_context>
chip_gen: v7x
topology: tpu7x:2x2x1
jax: 0.10.0
libtpu: 0.0.40
codegen_flags: <defaults>
</compile_context>

<pallas_src>
import jax
import jax.numpy as jnp
from jax.experimental import pallas as pl
from jax.experimental.pallas import tpu as pltpu

_LANE = 128
_SUBLANE = 8


def _rescale_kernel(x_ref, w_ref, b_ref, o_ref):
    # (tile_n, tile_d) * (1, tile_d) + (1, tile_d): pure VPU broadcast FMA.
    o_ref[...] = (x_ref[...] * w_ref[...] + b_ref[...]).astype(o_ref.dtype)


def _round_up(a, m):
    return ((a + m - 1) // m) * m


def _vmem_budgets():
    """Generation-aware (double-buffered tile budget, scoped vmem limit) in bytes."""
    cap = None
    try:
        info = pltpu.get_tpu_info()
        cap = getattr(info, "vmem_capacity_bytes", None)
    except Exception:  # pragma: no cover - hardware query may be unavailable
        cap = None
    if cap is not None and cap >= (96 << 20):
        # v5e / v6e: 128 MiB physical VMEM per TensorCore.
        return 48 << 20, 96 << 20
    # v7x (64 MiB per TensorCore) or unknown hardware: stay conservative.
    return 24 << 20, 48 << 20


def _choose_tiles(n, d, in_itemsize, out_itemsize, tile_budget):
    """Pick the largest (tile_n, tile_d) whose double-buffered x+out tiles fit."""
    # Sublane packing granularity of the narrowest dtype touching HBM
    # (8 rows for f32, 16 for bf16, 32 for int8/fp8).
    row_align = _SUBLANE * max(1, 4 // max(1, min(in_itemsize, out_itemsize)))
    per_elem = 2 * (in_itemsize + out_itemsize)  # 2x x-tile + 2x out-tile
    max_tile_elems = max(row_align * _LANE, tile_budget // per_elem)
    # Keep the full hidden dim per tile unless it is enormous; otherwise chunk
    # D in 128-lane multiples (cdiv grid handles the ragged tail).
    if d * row_align <= max_tile_elems:
        tile_d = d
    else:
        tile_d = max(_LANE, (max_tile_elems // (row_align * _LANE)) * _LANE)
    max_rows = max(row_align, (max_tile_elems // tile_d) // row_align * row_align)
    tile_n = min(_round_up(n, row_align), max_rows)   # no hard cap; budget-bound
    tile_n = max(tile_n, row_align)
    return tile_n, tile_d, row_align


def embedding_rescale(x, weight, bias, out_dtype=None):
    """out = x * weight + bias with weight/bias shaped (1, D), broadcast over rows."""
    N, D = x.shape
    weight = weight.reshape(1, D)
    bias = bias.reshape(1, D)

    # Default matches PyTorch broadcast-FMA promotion; callers may override
    # (e.g. bf16 output for bf16 x) to cut write bandwidth.
    if out_dtype is None:
        out_dtype = jnp.result_type(x.dtype, weight.dtype, bias.dtype)
    out_dtype = jnp.dtype(out_dtype)

    tile_budget, vmem_limit = _vmem_budgets()
    tile_n, tile_d, row_align = _choose_tiles(
        N, D, jnp.dtype(x.dtype).itemsize, out_dtype.itemsize, tile_budget)

    grid_d = pl.cdiv(D, tile_d)
    grid_n = pl.cdiv(N, tile_n)

    # Load balance / pipelining: a large problem that collapsed into 1-3 blocks
    # gets split into >=4 row tiles so both v7x TensorCores get balanced work
    # and writeback of block i overlaps input DMA of block i+1.  Tiny problems
    # (like the demo shape) stay single-block to avoid per-step overhead.
    out_bytes = N * D * out_dtype.itemsize
    if grid_n * grid_d < 4 and out_bytes > (2 << 20) and N >= 4 * row_align:
        target_row_blocks = max(2, 4 // grid_d)
        tile_n = max(row_align, _round_up(pl.cdiv(N, target_row_blocks), row_align))
        grid_n = pl.cdiv(N, tile_n)
    # TODO(synk): optionally sweep pipeline_mode=pl.Buffered(3) on the x spec for
    # very long row grids (shrinking tile_n to keep the working set in budget).

    out = pl.pallas_call(
        _rescale_kernel,
        out_shape=jax.ShapeDtypeStruct((N, D), out_dtype),
        grid_spec=pl.GridSpec(
            # D axis outermost so the tiny weight/bias tiles stay resident
            # across all row steps of a given column block.
            grid=(grid_d, grid_n),
            in_specs=[
                pl.BlockSpec((tile_n, tile_d), lambda j, i: (i, j)),  # x tile
                pl.BlockSpec((1, tile_d), lambda j, i: (0, j)),       # weight
                pl.BlockSpec((1, tile_d), lambda j, i: (0, j)),       # bias
            ],
            out_specs=pl.BlockSpec((tile_n, tile_d), lambda j, i: (i, j)),
        ),
        compiler_params=pltpu.CompilerParams(
            dimension_semantics=("parallel", "parallel"),
            vmem_limit_bytes=vmem_limit,
        ),
    )(x, weight, bias)
    return out


class EmbeddingRescaler:
    """JAX mirror of the PyTorch module (axes=(0,), shape=(D,))."""

    EPSILON = 1e-8

    def __init__(self, shape, axes=(0,)):
        expanded_shape = tuple(1 for _ in axes) + tuple(shape)
        self.weight = jnp.ones(expanded_shape, dtype=jnp.float32)
        self.bias = jnp.zeros(expanded_shape, dtype=jnp.float32)
        self.axes = axes

    def __call__(self, x, out_dtype=None):
        return embedding_rescale(x, self.weight, self.bias, out_dtype=out_dtype)

    @staticmethod
    def scale_to(x, target=None, target_means=None, target_stds=None, axes=(0,)):
        # Plain-JAX glue (one-time parameter setup, not the hot path).
        if isinstance(axes, int):
            axes = (axes,)
        if target_stds is None and target is not None:
            target_stds = jnp.std(target, axis=axes[0], ddof=1)
            for axis in axes[1:]:
                target_stds = jnp.std(target_stds, axis=axis - 1, ddof=1)
        if target_means is None and target is not None:
            target_means = jnp.mean(target, axis=0)
        x_stds = jnp.std(x, axis=axes[0], ddof=1)
        x_means = jnp.mean(x, axis=axes[0])
        for axis in axes[1:]:
            x_stds = jnp.std(x_stds, axis=axis - 1, ddof=1)
            x_means = jnp.mean(x_means, axis=axis - 1)
        w = (target_stds / (x_stds + EmbeddingRescaler.EPSILON))[None, ...]
        b = (target_means - x_means * w[0])[None, ...]
        return w, b


if __name__ == "__main__":
    key = jax.random.PRNGKey(0)
    k_x, k_t = jax.random.split(key)

    N, D = 128, 256  # small: 128 embedding rows, hidden dim 256 (single-block path)
    x = jax.random.normal(k_x, (N, D), dtype=jnp.float32) * 3.0 + 0.5

    # Build module as in __init__ (weight = ones, bias = zeros) ...
    rescaler = EmbeddingRescaler(shape=(D,), axes=(0,))

    # ... then set non-trivial weight/bias via scale_to (deterministic, in-script).
    target = jax.random.normal(k_t, (N, D), dtype=jnp.float32)
    w, b = EmbeddingRescaler.scale_to(x, target=target, axes=(0,))
    rescaler.weight, rescaler.bias = w, b

    out = rescaler(x)
    out = jax.block_until_ready(out)

    # Reference check against plain JAX broadcast multiply-add.
    ref = x * rescaler.weight + rescaler.bias
    assert out.shape == (N, D)
    assert out.dtype == ref.dtype
    assert jnp.allclose(out, ref, atol=1e-5, rtol=1e-5), "mismatch vs reference"

    # Ragged, non-aligned shape: exercises the cdiv grid / masked-edge path
    # (no wrapper-side padding or slicing anymore).
    N2, D2 = 1000, 300  # not multiples of 8/128
    x2 = jax.random.normal(k_x, (N2, D2), dtype=jnp.float32)
    w2 = jnp.linspace(0.5, 1.5, D2, dtype=jnp.float32)[None, :]
    b2 = jnp.linspace(-1.0, 1.0, D2, dtype=jnp.float32)[None, :]
    out2 = jax.block_until_ready(embedding_rescale(x2, w2, b2))
    ref2 = x2 * w2 + b2
    assert out2.shape == (N2, D2)
    assert jnp.allclose(out2, ref2, atol=1e-5, rtol=1e-5), "mismatch vs reference (ragged)"

    # bf16 input with explicit bf16 output override (reduced write traffic path).
    x3 = x.astype(jnp.bfloat16)
    out3 = jax.block_until_ready(
        embedding_rescale(x3, rescaler.weight, rescaler.bias, out_dtype=jnp.bfloat16))
    ref3 = (x3.astype(jnp.float32) * rescaler.weight + rescaler.bias).astype(jnp.bfloat16)
    assert out3.dtype == jnp.bfloat16
    assert jnp.allclose(out3.astype(jnp.float32), ref3.astype(jnp.float32),
                        atol=5e-2, rtol=5e-2), "mismatch vs reference (bf16)"

    print("KERNEL_OK")
</pallas_src>

<mosaic_0001>
module attributes {stable_mosaic.version = 11 : i64} {
  func.func @_rescale_kernel(%arg0: i32, %arg1: i32, %arg2: memref<128x256xf32, #tpu.memory_space<vmem>>, %arg3: memref<1x256xf32, #tpu.memory_space<vmem>>, %arg4: memref<1x256xf32, #tpu.memory_space<vmem>>, %arg5: memref<128x256xf32, #tpu.memory_space<vmem>>) attributes {dimension_semantics = [#tpu.dimension_semantics<parallel>, #tpu.dimension_semantics<parallel>], iteration_bounds = array<i64: 1, 1>, scalar_prefetch = 0 : i64, scratch_operands = 0 : i64, tpu.core_type = #tpu.core_type<tc>, window_params = [{transform_indices = @transform_0, window_bounds = array<i64: 128, 256>}, {transform_indices = @transform_1, window_bounds = array<i64: 1, 256>}, {transform_indices = @transform_2, window_bounds = array<i64: 1, 256>}, {transform_indices = @transform_3, window_bounds = array<i64: 128, 256>}]} {
    %c0 = arith.constant 0 : index
    %c0_0 = arith.constant 0 : index
    %0 = vector.load %arg2[%c0, %c0_0] : memref<128x256xf32, #tpu.memory_space<vmem>>, vector<128x256xf32>
    %c0_1 = arith.constant 0 : index
    %c0_2 = arith.constant 0 : index
    %1 = vector.load %arg3[%c0_1, %c0_2] : memref<1x256xf32, #tpu.memory_space<vmem>>, vector<1x256xf32>
    %2 = vector.broadcast %1 : vector<1x256xf32> to vector<128x256xf32>
    %3 = arith.mulf %0, %2 : vector<128x256xf32>
    %c0_3 = arith.constant 0 : index
    %c0_4 = arith.constant 0 : index
    %4 = vector.load %arg4[%c0_3, %c0_4] : memref<1x256xf32, #tpu.memory_space<vmem>>, vector<1x256xf32>
    %5 = vector.broadcast %4 : vector<1x256xf32> to vector<128x256xf32>
    %6 = arith.addf %3, %5 : vector<128x256xf32>
    %c0_5 = arith.constant 0 : index
    %c0_6 = arith.constant 0 : index
    %7 = vector.load %arg5[%c0_5, %c0_6] : memref<128x256xf32, #tpu.memory_space<vmem>>, vector<128x256xf32>
    tpu.vector_store %arg5[%c0_5, %c0_6], %6 {strides = array<i32>} : memref<128x256xf32, #tpu.memory_space<vmem>>, vector<128x256xf32>,
    return
  }
  func.func @transform_0(%arg0: i32, %arg1: i32) -> (i32, i32) {
    %c0_i32 = arith.constant 0 : i32
    return %arg1, %arg0 : i32, i32
  }
  func.func @transform_1(%arg0: i32, %arg1: i32) -> (i32, i32) {
    %c0_i32 = arith.constant 0 : i32
    %c0_i32_0 = arith.constant 0 : i32
    return %c0_i32, %arg0 : i32, i32
  }
  func.func @transform_2(%arg0: i32, %arg1: i32) -> (i32, i32) {
    %c0_i32 = arith.constant 0 : i32
    %c0_i32_0 = arith.constant 0 : i32
    return %c0_i32, %arg0 : i32, i32
  }
  func.func @transform_3(%arg0: i32, %arg1: i32) -> (i32, i32) {
    %c0_i32 = arith.constant 0 : i32
    return %arg1, %arg0 : i32, i32
  }
}

</mosaic_0001>

<bundles_post_ra>
// kernel: tpu_custom_call.1
= control target key start
LH: loop header
LB: loop body
LE: loop exit
PB: predicated region body
PF: predicated region fallthrough
CT: control target
= control target key end

     0   :  { %8 = vsyncpa [#allocation3], 0  ;;  %s382_s0 = inlined_call_operand.hbm [shape: f32[128,256], index: 0, kind: input, shape index: {}]   ;;  %s383_s1 = inlined_call_operand.vmem [shape: f32[1,256], index: 1, kind: input, shape index: {}]   ;;  %s384_s2 = inlined_call_operand.vmem [shape: f32[1,256], index: 2, kind: input, shape index: {}]   ;;  %s385_s3 = inlined_call_operand.hbm [shape: f32[128,256], index: 3, kind: output, shape index: {}]  }
   0x1   :  { %9 = vsyncpa [#allocation4], 0  ;;  %s250_s12 = smov [#allocation2]   ;;  %s202_s16 = scalar_lea.hbm %s382_s0, 4096 }
   0x2   :  { %s15_s13 = sshll.u32 %s250_s12, 4  ;;  %p203_p0 = scmp.ne.s32.totalorder %s382_s0, %s202_s16  ;;  %s16_s13 = int_to_ptr.vmem [resolvable:$true] %s15_s13 }
   0x3   :  { %p206_p1 = scmp.lt.u32.totalorder %s202_s16, %s382_s0 }
   0x5   :  { %p208_p2 = pnand %p206_p1, %p203_p0 }
   0x7   :  { %211 = shalt.err (!%p208_p2)
}
   0x8   :  { %s212_s21 = scalar_lea.vmem %s16_s13, 4096  ;;  %p217_p4 = scmp.lt.s32.totalorder %s16_s13, %s16_s13 }
   0x9   :  { %p213_p3 = scmp.ne.s32.totalorder %s16_s13, %s212_s21  ;;  %p218_p5 = scmp.lt.s32.totalorder %s212_s21, %s212_s21 }
   0xb   :  { %p219_p6 = por %p218_p5, %p217_p4 }
   0xd   :  { %p220_p7 = pnand %p219_p6, %p213_p3 }
   0xf   :  { %223 = shalt.err (!%p220_p7)
}
  0x10   :  { %s251_s22 = smov 256   ;;  %s252_s23 = smov 16  }
  0x11   :  { %21 = dma.hbm_to_vmem [thread:$0]  %s382_s0, 4096, %s16_s13, [#allocation3], %s251_s22, %s251_s22, %s252_s23  }
  0x12   :  { %246 = dma.done.wait [#allocation3], 4096  }
  0x13   :  { %247 = vsyncadd [#allocation3], 4294963200  ;;  %v63_v0 = vlaneseq  ;;  %v29_v4 = vld [vmem:[#allocation2] sm:$0xff]  ;;  %v30_v9 = vld [vmem:[#allocation2 + $0x8] sm:$0xff]  ;;  %s253_s0 = smov [#allocation5]  }
  0x14   :  { %v61_v5 = vld [vmem:[%s383_s1] sm:$0x3]  ;;  %v31_v12 = vld [vmem:[#allocation2 + $0x10] sm:$0xff]  ;;  %v32_v13 = vld [vmem:[#allocation2 + $0x18] sm:$0xff]  ;;  %s186_s1 = sshll.u32 %s253_s0, 4  ;;  %s187_s1 = int_to_ptr.vmem [resolvable:$true] %s186_s1 }
  0x15   :  { %v64_v1 = vshrl.u32 %v63_v0, 7  ;;  %v105_v6 = vld [vmem:[%s384_s2] sm:$0x3]  ;;  %v34_v15 = vld [vmem:[#allocation2 + $0x28] sm:$0xff]  ;;  %v35_v16 = vld [vmem:[#allocation2 + $0x30] sm:$0xff]  ;;  %s224_s2 = scalar_lea.vmem %s187_s1, 4096  ;;  %p229_p9 = scmp.lt.s32.totalorder %s187_s1, %s187_s1 }
  0x16   :  { %v33_v14 = vld [vmem:[#allocation2 + $0x20] sm:$0xff]  ;;  %v36_v21 = vld [vmem:[#allocation2 + $0x38] sm:$0xff]  ;;  %v38_v23 = vld [vmem:[#allocation2 + $0x48] sm:$0xff]  ;;  %p225_p8 = scmp.ne.s32.totalorder %s187_s1, %s224_s2  ;;  %p230_p10 = scmp.lt.s32.totalorder %s224_s2, %s224_s2 }
  0x17   :  { %v65_v2 = vsub.s32 0, %v64_v1  ;;  %v69_v3 = vsub.s32 1, %v64_v1  ;;  %v37_v22 = vld [vmem:[#allocation2 + $0x40] sm:$0xff]  ;;  %v39_v28 = vld [vmem:[#allocation2 + $0x50] sm:$0xff]  ;;  %v40_v29 = vld [vmem:[#allocation2 + $0x58] sm:$0xff] }
  0x18   :  { %v41_v30 = vld [vmem:[#allocation2 + $0x60] sm:$0xff]  ;;  %v42_v35 = vld [vmem:[#allocation2 + $0x68] sm:$0xff]  ;;  %v43_v36 = vld [vmem:[#allocation2 + $0x70] sm:$0xff]  ;;  %p231_p11 = por %p230_p10, %p229_p9 }
  0x19   :  { %v295_v7 = vrot.slane %v61_v5, %v65_v2  ;;  %v297_v8 = vrot.slane %v105_v6, %v65_v2  ;;  %v299_v10 = vrot.slane %v61_v5, %v69_v3  ;;  %v301_v11 = vrot.slane %v105_v6, %v69_v3  ;;  %v44_v37 = vld [vmem:[#allocation2 + $0x78] sm:$0xff]  ;;  %v45_v46 = vld [vmem:[#allocation2 + $0x80] sm:$0xff]  ;;  %v46_v47 = vld [vmem:[#allocation2 + $0x88] sm:$0xff] }
  0x1a   :  { %v47_v52 = vld [vmem:[#allocation2 + $0x90] sm:$0xff]  ;;  %v48_v53 = vld [vmem:[#allocation2 + $0x98] sm:$0xff]  ;;  %v49_v54 = vld [vmem:[#allocation2 + $0xa0] sm:$0xff]  ;;  %p232_p12 = pnand %p231_p11, %p225_p8 }
  0x1b   :  { %v73_v17 = vmul.f32 %v295_v7, %v29_v4  ;;  %v74_v18 = vmul.f32 %v299_v10, %v30_v9  ;;  %v75_v19 = vmul.f32 %v295_v7, %v31_v12  ;;  %v76_v20 = vmul.f32 %v299_v10, %v32_v13  ;;  %v50_v59 = vld [vmem:[#allocation2 + $0xa8] sm:$0xff]  ;;  %v51_v60 = vld [vmem:[#allocation2 + $0xb0] sm:$0xff]  ;;  %v52_v61 = vld [vmem:[#allocation2 + $0xb8] sm:$0xff] }
  0x1c   :  { %v77_v24 = vmul.f32 %v295_v7, %v33_v14  ;;  %v78_v25 = vmul.f32 %v299_v10, %v34_v15  ;;  %v79_v26 = vmul.f32 %v295_v7, %v35_v16  ;;  %v80_v27 = vmul.f32 %v299_v10, %v36_v21  ;;  %v53_v6 = vld [vmem:[#allocation2 + $0xc0] sm:$0xff]  ;;  %v54_v9 = vld [vmem:[#allocation2 + $0xc8] sm:$0xff]  ;;  %v55_v16 = vld [vmem:[#allocation2 + $0xd0] sm:$0xff] }
  0x1d   :  { %v117_v31 = vadd.f32 %v297_v8, %v73_v17  ;;  %v118_v32 = vadd.f32 %v301_v11, %v74_v18  ;;  %v119_v33 = vadd.f32 %v297_v8, %v75_v19  ;;  %v120_v34 = vadd.f32 %v301_v11, %v76_v20  ;;  %v56_v17 = vld [vmem:[#allocation2 + $0xd8] sm:$0xff]  ;;  %v57_v18 = vld [vmem:[#allocation2 + $0xe0] sm:$0xff] }
  0x1e   :  { %v121_v38 = vadd.f32 %v297_v8, %v77_v24  ;;  %v122_v39 = vadd.f32 %v301_v11, %v78_v25  ;;  %v123_v40 = vadd.f32 %v297_v8, %v79_v26  ;;  %v124_v41 = vadd.f32 %v301_v11, %v80_v27  ;;  %v59_v24 = vld [vmem:[#allocation2 + $0xf0] sm:$0xff]  ;;  %v60_v25 = vld [vmem:[#allocation2 + $0xf8] sm:$0xff] }
  0x1f   :  { %149 = vst [vmem:[#allocation5] sm:$0xff] %v117_v31  ;;  %150 = vst [vmem:[#allocation5 + $0x8] sm:$0xff] %v118_v32  ;;  %v81_v42 = vmul.f32 %v295_v7, %v37_v22  ;;  %v82_v43 = vmul.f32 %v299_v10, %v38_v23  ;;  %v83_v44 = vmul.f32 %v295_v7, %v39_v28  ;;  %v58_v23 = vld [vmem:[#allocation2 + $0xe8] sm:$0xff] }
  0x20   :  { %151 = vst [vmem:[#allocation5 + $0x10] sm:$0xff] %v119_v33  ;;  %152 = vst [vmem:[#allocation5 + $0x18] sm:$0xff] %v120_v34  ;;  %v84_v45 = vmul.f32 %v299_v10, %v40_v29  ;;  %v85_v48 = vmul.f32 %v295_v7, %v41_v30  ;;  %v86_v49 = vmul.f32 %v299_v10, %v42_v35 }
  0x21   :  { %153 = vst [vmem:[#allocation5 + $0x20] sm:$0xff] %v121_v38  ;;  %154 = vst [vmem:[#allocation5 + $0x28] sm:$0xff] %v122_v39  ;;  %v87_v50 = vmul.f32 %v295_v7, %v43_v36  ;;  %v88_v51 = vmul.f32 %v299_v10, %v44_v37  ;;  %v125_v55 = vadd.f32 %v297_v8, %v81_v42 }
  0x22   :  { %155 = vst [vmem:[#allocation5 + $0x30] sm:$0xff] %v123_v40  ;;  %156 = vst [vmem:[#allocation5 + $0x38] sm:$0xff] %v124_v41  ;;  %v126_v56 = vadd.f32 %v301_v11, %v82_v43  ;;  %v127_v57 = vadd.f32 %v297_v8, %v83_v44  ;;  %v128_v58 = vadd.f32 %v301_v11, %v84_v45 }
  0x23   :  { %v129_v62 = vadd.f32 %v297_v8, %v85_v48  ;;  %v130_v63 = vadd.f32 %v301_v11, %v86_v49  ;;  %v131_v0 = vadd.f32 %v297_v8, %v87_v50  ;;  %v132_v1 = vadd.f32 %v301_v11, %v88_v51  ;;  %157 = vst [vmem:[#allocation5 + $0x40] sm:$0xff] %v125_v55 }
  0x24   :  { %158 = vst [vmem:[#allocation5 + $0x48] sm:$0xff] %v126_v56  ;;  %159 = vst [vmem:[#allocation5 + $0x50] sm:$0xff] %v127_v57  ;;  %v89_v2 = vmul.f32 %v295_v7, %v45_v46  ;;  %v90_v3 = vmul.f32 %v299_v10, %v46_v47  ;;  %v91_v4 = vmul.f32 %v295_v7, %v47_v52 }
  0x25   :  { %160 = vst [vmem:[#allocation5 + $0x58] sm:$0xff] %v128_v58  ;;  %v92_v5 = vmul.f32 %v299_v10, %v48_v53  ;;  %161 = vst [vmem:[#allocation5 + $0x60] sm:$0xff] %v129_v62  ;;  %v93_v12 = vmul.f32 %v295_v7, %v49_v54  ;;  %v94_v13 = vmul.f32 %v299_v10, %v50_v59 }
  0x26   :  { %162 = vst [vmem:[#allocation5 + $0x68] sm:$0xff] %v130_v63  ;;  %163 = vst [vmem:[#allocation5 + $0x70] sm:$0xff] %v131_v0  ;;  %v95_v14 = vmul.f32 %v295_v7, %v51_v60  ;;  %v96_v15 = vmul.f32 %v299_v10, %v52_v61  ;;  %v133_v19 = vadd.f32 %v297_v8, %v89_v2 }
  0x27   :  { %164 = vst [vmem:[#allocation5 + $0x78] sm:$0xff] %v132_v1  ;;  %v134_v20 = vadd.f32 %v301_v11, %v90_v3  ;;  %v135_v21 = vadd.f32 %v297_v8, %v91_v4  ;;  %v136_v22 = vadd.f32 %v301_v11, %v92_v5  ;;  %v137_v26 = vadd.f32 %v297_v8, %v93_v12 }
  0x28   :  { %v138_v27 = vadd.f32 %v301_v11, %v94_v13  ;;  %v139_v28 = vadd.f32 %v297_v8, %v95_v14  ;;  %v140_v29 = vadd.f32 %v301_v11, %v96_v15  ;;  %165 = vst [vmem:[#allocation5 + $0x80] sm:$0xff] %v133_v19  ;;  %v97_v30 = vmul.f32 %v295_v7, %v53_v6 }
  0x29   :  { %166 = vst [vmem:[#allocation5 + $0x88] sm:$0xff] %v134_v20  ;;  %167 = vst [vmem:[#allocation5 + $0x90] sm:$0xff] %v135_v21  ;;  %v98_v31 = vmul.f32 %v299_v10, %v54_v9  ;;  %v99_v32 = vmul.f32 %v295_v7, %v55_v16  ;;  %v100_v33 = vmul.f32 %v299_v10, %v56_v17 }
  0x2a   :  { %168 = vst [vmem:[#allocation5 + $0x98] sm:$0xff] %v136_v22  ;;  %169 = vst [vmem:[#allocation5 + $0xa0] sm:$0xff] %v137_v26  ;;  %v101_v34 = vmul.f32 %v295_v7, %v57_v18  ;;  %v102_v35 = vmul.f32 %v299_v10, %v58_v23  ;;  %v103_v36 = vmul.f32 %v295_v7, %v59_v24 }
  0x2b   :  { %170 = vst [vmem:[#allocation5 + $0xa8] sm:$0xff] %v138_v27  ;;  %171 = vst [vmem:[#allocation5 + $0xb0] sm:$0xff] %v139_v28  ;;  %v104_v37 = vmul.f32 %v299_v10, %v60_v25  ;;  %v141_v38 = vadd.f32 %v297_v8, %v97_v30  ;;  %v142_v39 = vadd.f32 %v301_v11, %v98_v31 }
  0x2c   :  { %172 = vst [vmem:[#allocation5 + $0xb8] sm:$0xff] %v140_v29  ;;  %v143_v40 = vadd.f32 %v297_v8, %v99_v32  ;;  %v144_v41 = vadd.f32 %v301_v11, %v100_v33  ;;  %v145_v42 = vadd.f32 %v297_v8, %v101_v34  ;;  %v146_v43 = vadd.f32 %v301_v11, %v102_v35 }
  0x2d   :  { %v147_v44 = vadd.f32 %v297_v8, %v103_v36  ;;  %v148_v45 = vadd.f32 %v301_v11, %v104_v37  ;;  %173 = vst [vmem:[#allocation5 + $0xc0] sm:$0xff] %v141_v38  ;;  %174 = vst [vmem:[#allocation5 + $0xc8] sm:$0xff] %v142_v39 }
  0x2e   :  { %175 = vst [vmem:[#allocation5 + $0xd0] sm:$0xff] %v143_v40  ;;  %176 = vst [vmem:[#allocation5 + $0xd8] sm:$0xff] %v144_v41 }
  0x2f   :  { %177 = vst [vmem:[#allocation5 + $0xe0] sm:$0xff] %v145_v42  ;;  %178 = vst [vmem:[#allocation5 + $0xe8] sm:$0xff] %v146_v43 }
  0x30   :  { %179 = vst [vmem:[#allocation5 + $0xf0] sm:$0xff] %v147_v44  ;;  %180 = vst [vmem:[#allocation5 + $0xf8] sm:$0xff] %v148_v45 }
  0x31   :  { %235 = shalt.err (!%p232_p12)
}
  0x32   :  { %s236_s5 = scalar_lea.hbm %s385_s3, 4096 }
  0x33   :  { %p237_p13 = scmp.ne.s32.totalorder %s385_s3, %s236_s5  ;;  %p240_p0 = scmp.lt.u32.totalorder %s236_s5, %s385_s3 }
  0x35   :  { %p242_p1 = pnand %p240_p0, %p237_p13 }
  0x37   :  { %245 = shalt.err (!%p242_p1)
}
  0x38   :  { %192 = dma.vmem_to_hbm [thread:$0]  %s187_s1, 4096, %s385_s3, [#allocation4], %s251_s22, %s251_s22, %s252_s23  }
  0x39   :  { %248 = dma.done.wait [#allocation4], 4096  }
  0x3a   :  { %249 = vsyncadd [#allocation4], 4294963200 }
  0x3b   :  { %196 = vsyncpa [#allocation3], 1 }
  0x3c   :  { %197 = vsyncpa [#allocation4], 1 }

</bundles_post_ra>
